<compile_context>
chip_gen: v6e
topology: v6e:2x2x1
jax: 0.10.0
libtpu: 0.0.40
codegen_flags: <defaults>
</compile_context>

<pallas_src>
import functools
import math

import jax
import jax.numpy as jnp
from jax import lax
from jax.experimental import pallas as pl
from jax.experimental.pallas import tpu as pltpu


def attn_kernel(x_ref, mask_ref,
                wq_ref, bq_ref, wk_ref, bk_ref, wv_ref, bv_ref,
                wd_ref, bd_ref, g_ref, beta_ref,
                o_ref, score_ref,
                *, num_heads, head_dim):
    x = x_ref[...]                                    # [S, H], input dtype
    S, H = x.shape
    scale = 1.0 / math.sqrt(head_dim)

    # Q / K / V projections (MXU, f32 accumulation).
    q = jnp.dot(x, wq_ref[...], preferred_element_type=jnp.float32) + bq_ref[...].astype(jnp.float32)
    k = jnp.dot(x, wk_ref[...], preferred_element_type=jnp.float32) + bk_ref[...].astype(jnp.float32)
    v = jnp.dot(x, wv_ref[...], preferred_element_type=jnp.float32) + bv_ref[...].astype(jnp.float32)

    # Additive attention-mask bias: [1, S_k], broadcasts over query rows.
    mask_bias = mask_ref[0].astype(jnp.float32) * (-10000.0)

    # Accumulate the output projection per head: dense(ctx) = sum_h ctx_h @ Wd[h].
    y = jnp.zeros((S, H), jnp.float32)
    for h in range(num_heads):
        lo = h * head_dim
        qh = q[:, lo:lo + head_dim]                   # [S, dh]
        kh = k[:, lo:lo + head_dim]
        vh = v[:, lo:lo + head_dim]

        s = jnp.dot(qh, kh.T, preferred_element_type=jnp.float32) * scale + mask_bias  # [S, S]
        score_ref[h, :, :] = s.astype(score_ref.dtype)

        # Numerically-stable softmax over keys (f32).
        m = jnp.max(s, axis=-1, keepdims=True)
        e = jnp.exp(s - m)
        p = e / jnp.sum(e, axis=-1, keepdims=True)
        # TODO(synk): attn_dropout implemented as identity (eval-mode semantics);
        # training mode would use pltpu.prng_seed / prng_random_bits + 1/(1-p) scaling.

        ctx = jnp.dot(p.astype(vh.dtype), vh, preferred_element_type=jnp.float32)       # [S, dh]
        wdh = wd_ref[pl.ds(lo, head_dim), :]                                             # [dh, H]
        y = y + jnp.dot(ctx.astype(wdh.dtype), wdh, preferred_element_type=jnp.float32)

    y = y + bd_ref[...].astype(jnp.float32)
    # TODO(synk): hidden_dropout implemented as identity (eval-mode semantics).

    # Residual + LayerNorm (eps=1e-5), single-pass mean / mean-of-squares.
    z = x.astype(jnp.float32) + y
    mean = jnp.mean(z, axis=-1, keepdims=True)
    msq = jnp.mean(z * z, axis=-1, keepdims=True)
    var = msq - mean * mean
    out = (z - mean) * lax.rsqrt(var + 1e-5) * g_ref[...].astype(jnp.float32) \
          + beta_ref[...].astype(jnp.float32)
    o_ref[...] = out.astype(o_ref.dtype)


def bert_attention(x, attn_mask, wq, bq, wk, bk, wv, bv, wd, bd, gamma, beta, *, num_heads):
    """x: [B, S, H]; attn_mask: [B, S]; w*: [H, H] ([in, out]); b*/gamma/beta: [H]."""
    B, S, H = x.shape
    assert H % num_heads == 0
    head_dim = H // num_heads
    N = B * S

    x2 = x.reshape(N, H)
    mask3 = attn_mask.reshape(B, 1, S).astype(x.dtype)
    bq2, bk2, bv2, bd2 = (b.reshape(1, H) for b in (bq, bk, bv, bd))
    g2, be2 = gamma.reshape(1, H), beta.reshape(1, H)

    kernel = functools.partial(attn_kernel, num_heads=num_heads, head_dim=head_dim)

    const = lambda i: (0, 0)
    out, scores = pl.pallas_call(
        kernel,
        out_shape=(
            jax.ShapeDtypeStruct((N, H), x.dtype),                       # layernorm output
            jax.ShapeDtypeStruct((B * num_heads, S, S), jnp.float32),    # masked attn scores
        ),
        grid_spec=pltpu.PrefetchScalarGridSpec(
            num_scalar_prefetch=0,
            grid=(B,),
            in_specs=[
                pl.BlockSpec((S, H), lambda i: (i, 0)),        # x rows of batch i
                pl.BlockSpec((1, 1, S), lambda i: (i, 0, 0)),  # attn mask
                pl.BlockSpec((H, H), const),                   # Wq (resident)
                pl.BlockSpec((1, H), const),                   # bq
                pl.BlockSpec((H, H), const),                   # Wk
                pl.BlockSpec((1, H), const),                   # bk
                pl.BlockSpec((H, H), const),                   # Wv
                pl.BlockSpec((1, H), const),                   # bv
                pl.BlockSpec((H, H), const),                   # Wd (output proj)
                pl.BlockSpec((1, H), const),                   # bd
                pl.BlockSpec((1, H), const),                   # gamma
                pl.BlockSpec((1, H), const),                   # beta
            ],
            out_specs=[
                pl.BlockSpec((S, H), lambda i: (i, 0)),
                pl.BlockSpec((num_heads, S, S), lambda i: (i, 0, 0)),
            ],
        ),
        compiler_params=pltpu.CompilerParams(
            dimension_semantics=("parallel",),
            vmem_limit_bytes=48 * 1024 * 1024,
        ),
    )(x2, mask3, wq, bq2, wk, bk2, wv, bv2, wd, bd2, g2, be2)

    # TODO(synk): CKA (CKA_Minibatch_Grid) path has no Pallas equivalent; the
    # default forward (is_calc_cka=False) returns avg_cka = 0.
    avg_cka = 0.0
    return out.reshape(B, S, H), scores.reshape(B, num_heads, S, S), avg_cka


def _reference(x, attn_mask, wq, bq, wk, bk, wv, bv, wd, bd, gamma, beta, num_heads):
    B, S, H = x.shape
    dh = H // num_heads
    q = (x @ wq + bq).reshape(B, S, num_heads, dh).transpose(0, 2, 1, 3)
    k = (x @ wk + bk).reshape(B, S, num_heads, dh).transpose(0, 2, 1, 3)
    v = (x @ wv + bv).reshape(B, S, num_heads, dh).transpose(0, 2, 1, 3)
    score = jnp.einsum("bhqd,bhkd->bhqk", q, k) / math.sqrt(dh)
    score = score + attn_mask[:, None, None, :] * -10000.0
    prob = jax.nn.softmax(score, axis=-1)
    ctx = jnp.einsum("bhqk,bhkd->bhqd", prob, v)
    ctx = ctx.transpose(0, 2, 1, 3).reshape(B, S, H)
    z = x + (ctx @ wd + bd)
    mean = jnp.mean(z, -1, keepdims=True)
    var = jnp.mean((z - mean) ** 2, -1, keepdims=True)
    out = (z - mean) / jnp.sqrt(var + 1e-5) * gamma + beta
    return out, score


if __name__ == "__main__":
    # Small config: batch=2, seq=8, hidden=32, num_attn_heads=4 (head_dim=8).
    B, S, H, NH = 2, 8, 32, 4
    key = jax.random.PRNGKey(0)
    ks = jax.random.split(key, 10)

    x = jax.random.normal(ks[0], (B, S, H), dtype=jnp.float32)
    # attn_mask: 1.0 marks padded positions (gets * -10000), 0.0 elsewhere.
    attn_mask = (jax.random.uniform(ks[1], (B, S)) > 0.75).astype(jnp.float32)

    def lin(kw, kb, din, dout):
        w = jax.random.uniform(kw, (din, dout), jnp.float32, -1.0, 1.0) / math.sqrt(din)
        b = jax.random.uniform(kb, (dout,), jnp.float32, -1.0, 1.0) / math.sqrt(din)
        return w, b

    wq, bq = lin(ks[2], ks[3], H, H)
    wk, bk = lin(ks[4], ks[5], H, H)
    wv, bv = lin(ks[6], ks[7], H, H)
    wd, bd = lin(ks[8], ks[9], H, H)
    gamma = jnp.ones((H,), jnp.float32)
    beta = jnp.zeros((H,), jnp.float32)

    out, scores, avg_cka = bert_attention(
        x, attn_mask, wq, bq, wk, bk, wv, bv, wd, bd, gamma, beta, num_heads=NH)
    out = jax.block_until_ready(out)
    scores = jax.block_until_ready(scores)

    ref_out, ref_scores = _reference(
        x, attn_mask, wq, bq, wk, bk, wv, bv, wd, bd, gamma, beta, NH)

    assert out.shape == (B, S, H)
    assert scores.shape == (B, NH, S, S)
    assert jnp.allclose(out, ref_out, atol=1e-4, rtol=1e-4), "output mismatch vs reference"
    assert jnp.allclose(scores, ref_scores, atol=1e-4, rtol=1e-4), "attn_score mismatch vs reference"

    print("KERNEL_OK")
</pallas_src>

<mosaic_0001>
module attributes {stable_mosaic.version = 11 : i64} {
  func.func @attn_kernel(%arg0: i32, %arg1: memref<8x32xf32, #tpu.memory_space<vmem>>, %arg2: memref<1x1x8xf32, #tpu.memory_space<vmem>>, %arg3: memref<32x32xf32, #tpu.memory_space<vmem>>, %arg4: memref<1x32xf32, #tpu.memory_space<vmem>>, %arg5: memref<32x32xf32, #tpu.memory_space<vmem>>, %arg6: memref<1x32xf32, #tpu.memory_space<vmem>>, %arg7: memref<32x32xf32, #tpu.memory_space<vmem>>, %arg8: memref<1x32xf32, #tpu.memory_space<vmem>>, %arg9: memref<32x32xf32, #tpu.memory_space<vmem>>, %arg10: memref<1x32xf32, #tpu.memory_space<vmem>>, %arg11: memref<1x32xf32, #tpu.memory_space<vmem>>, %arg12: memref<1x32xf32, #tpu.memory_space<vmem>>, %arg13: memref<8x32xf32, #tpu.memory_space<vmem>>, %arg14: memref<4x8x8xf32, #tpu.memory_space<vmem>>) attributes {dimension_semantics = [#tpu.dimension_semantics<parallel>], iteration_bounds = array<i64: 2>, scalar_prefetch = 0 : i64, scratch_operands = 0 : i64, tpu.core_type = #tpu.core_type<tc>, window_params = [{transform_indices = @transform_0, window_bounds = array<i64: 8, 32>}, {transform_indices = @transform_1, window_bounds = array<i64: 1, 1, 8>}, {pipeline_mode = #tpu.pipeline_mode<synchronous>, transform_indices = @transform_2, window_bounds = array<i64: 32, 32>}, {pipeline_mode = #tpu.pipeline_mode<synchronous>, transform_indices = @transform_3, window_bounds = array<i64: 1, 32>}, {pipeline_mode = #tpu.pipeline_mode<synchronous>, transform_indices = @transform_4, window_bounds = array<i64: 32, 32>}, {pipeline_mode = #tpu.pipeline_mode<synchronous>, transform_indices = @transform_5, window_bounds = array<i64: 1, 32>}, {pipeline_mode = #tpu.pipeline_mode<synchronous>, transform_indices = @transform_6, window_bounds = array<i64: 32, 32>}, {pipeline_mode = #tpu.pipeline_mode<synchronous>, transform_indices = @transform_7, window_bounds = array<i64: 1, 32>}, {pipeline_mode = #tpu.pipeline_mode<synchronous>, transform_indices = @transform_8, window_bounds = array<i64: 32, 32>}, {pipeline_mode = #tpu.pipeline_mode<synchronous>, transform_indices = @transform_9, window_bounds = array<i64: 1, 32>}, {pipeline_mode = #tpu.pipeline_mode<synchronous>, transform_indices = @transform_10, window_bounds = array<i64: 1, 32>}, {pipeline_mode = #tpu.pipeline_mode<synchronous>, transform_indices = @transform_11, window_bounds = array<i64: 1, 32>}, {transform_indices = @transform_12, window_bounds = array<i64: 8, 32>}, {transform_indices = @transform_13, window_bounds = array<i64: 4, 8, 8>}]} {
    %c0 = arith.constant 0 : index
    %c0_0 = arith.constant 0 : index
    %0 = vector.load %arg1[%c0, %c0_0] : memref<8x32xf32, #tpu.memory_space<vmem>>, vector<8x32xf32>
    %c0_1 = arith.constant 0 : index
    %c0_2 = arith.constant 0 : index
    %1 = vector.load %arg3[%c0_1, %c0_2] : memref<32x32xf32, #tpu.memory_space<vmem>>, vector<32x32xf32>
    %cst = arith.constant dense<0.000000e+00> : vector<8x32xf32>
    %2 = tpu.matmul %0, %1, %cst {dimension_numbers = #tpu.dot_dimension_numbers<[1], [0], [0], [1], [0, 0, 1, 1], [], []>} : vector<8x32xf32>, vector<32x32xf32>, vector<8x32xf32> -> vector<8x32xf32>
    %c0_3 = arith.constant 0 : index
    %c0_4 = arith.constant 0 : index
    %3 = vector.load %arg4[%c0_3, %c0_4] : memref<1x32xf32, #tpu.memory_space<vmem>>, vector<1x32xf32>
    %4 = vector.broadcast %3 : vector<1x32xf32> to vector<8x32xf32>
    %5 = arith.addf %2, %4 : vector<8x32xf32>
    %c0_5 = arith.constant 0 : index
    %c0_6 = arith.constant 0 : index
    %6 = vector.load %arg5[%c0_5, %c0_6] : memref<32x32xf32, #tpu.memory_space<vmem>>, vector<32x32xf32>
    %cst_7 = arith.constant dense<0.000000e+00> : vector<8x32xf32>
    %7 = tpu.matmul %0, %6, %cst_7 {dimension_numbers = #tpu.dot_dimension_numbers<[1], [0], [0], [1], [0, 0, 1, 1], [], []>} : vector<8x32xf32>, vector<32x32xf32>, vector<8x32xf32> -> vector<8x32xf32>
    %c0_8 = arith.constant 0 : index
    %c0_9 = arith.constant 0 : index
    %8 = vector.load %arg6[%c0_8, %c0_9] : memref<1x32xf32, #tpu.memory_space<vmem>>, vector<1x32xf32>
    %9 = vector.broadcast %8 : vector<1x32xf32> to vector<8x32xf32>
    %10 = arith.addf %7, %9 : vector<8x32xf32>
    %c0_10 = arith.constant 0 : index
    %c0_11 = arith.constant 0 : index
    %11 = vector.load %arg7[%c0_10, %c0_11] : memref<32x32xf32, #tpu.memory_space<vmem>>, vector<32x32xf32>
    %cst_12 = arith.constant dense<0.000000e+00> : vector<8x32xf32>
    %12 = tpu.matmul %0, %11, %cst_12 {dimension_numbers = #tpu.dot_dimension_numbers<[1], [0], [0], [1], [0, 0, 1, 1], [], []>} : vector<8x32xf32>, vector<32x32xf32>, vector<8x32xf32> -> vector<8x32xf32>
    %c0_13 = arith.constant 0 : index
    %c0_14 = arith.constant 0 : index
    %13 = vector.load %arg8[%c0_13, %c0_14] : memref<1x32xf32, #tpu.memory_space<vmem>>, vector<1x32xf32>
    %14 = vector.broadcast %13 : vector<1x32xf32> to vector<8x32xf32>
    %15 = arith.addf %12, %14 : vector<8x32xf32>
    %c0_15 = arith.constant 0 : index
    %c0_16 = arith.constant 0 : index
    %c0_17 = arith.constant 0 : index
    %16 = vector.load %arg2[%c0_15, %c0_16, %c0_17] : memref<1x1x8xf32, #tpu.memory_space<vmem>>, vector<1x1x8xf32>
    %17 = vector.shape_cast %16 : vector<1x1x8xf32> to vector<1x8xf32>
    %cst_18 = arith.constant -1.000000e+04 : f32
    %18 = vector.broadcast %cst_18 : f32 to vector<1x8xf32>
    %19 = arith.mulf %17, %18 : vector<1x8xf32>
    %cst_19 = arith.constant 0.000000e+00 : f32
    %20 = vector.broadcast %cst_19 : f32 to vector<8x32xf32>
    %21 = vector.extract_strided_slice %5 {offsets = [0, 0], sizes = [8, 8], strides = [1, 1]} : vector<8x32xf32> to vector<8x8xf32>
    %22 = vector.extract_strided_slice %10 {offsets = [0, 0], sizes = [8, 8], strides = [1, 1]} : vector<8x32xf32> to vector<8x8xf32>
    %23 = vector.extract_strided_slice %15 {offsets = [0, 0], sizes = [8, 8], strides = [1, 1]} : vector<8x32xf32> to vector<8x8xf32>
    %24 = tpu.transpose %22, [1, 0] : vector<8x8xf32> -> vector<8x8xf32>
    %cst_20 = arith.constant dense<0.000000e+00> : vector<8x8xf32>
    %25 = tpu.matmul %21, %24, %cst_20 {dimension_numbers = #tpu.dot_dimension_numbers<[1], [0], [0], [1], [0, 0, 1, 1], [], []>} : vector<8x8xf32>, vector<8x8xf32>, vector<8x8xf32> -> vector<8x8xf32>
    %cst_21 = arith.constant 0.353553385 : f32
    %26 = vector.broadcast %cst_21 : f32 to vector<8x8xf32>
    %27 = arith.mulf %25, %26 : vector<8x8xf32>
    %28 = vector.broadcast %19 : vector<1x8xf32> to vector<8x8xf32>
    %29 = arith.addf %27, %28 : vector<8x8xf32>
    %c0_22 = arith.constant 0 : index
    %c0_23 = arith.constant 0 : index
    %c0_24 = arith.constant 0 : index
    %30 = vector.load %arg14[%c0_22, %c0_23, %c0_24] : memref<4x8x8xf32, #tpu.memory_space<vmem>>, vector<1x8x8xf32>
    %31 = vector.shape_cast %30 : vector<1x8x8xf32> to vector<8x8xf32>
    %32 = vector.shape_cast %29 : vector<8x8xf32> to vector<1x8x8xf32>
    tpu.vector_store %arg14[%c0_22, %c0_23, %c0_24], %32 {strides = array<i32>} : memref<4x8x8xf32, #tpu.memory_space<vmem>>, vector<1x8x8xf32>,
    %cst_25 = arith.constant dense<0xFF800000> : vector<8xf32>
    %33 = vector.multi_reduction <maximumf>, %29, %cst_25 [1] : vector<8x8xf32> to vector<8xf32>
    %34 = vector.shape_cast %33 : vector<8xf32> to vector<8x1xf32>
    %35 = vector.broadcast %34 : vector<8x1xf32> to vector<8x8xf32>
    %36 = arith.subf %29, %35 : vector<8x8xf32>
    %37 = math.exp %36 : vector<8x8xf32>
    %cst_26 = arith.constant dense<0.000000e+00> : vector<8xf32>
    %38 = vector.multi_reduction <add>, %37, %cst_26 [1] : vector<8x8xf32> to vector<8xf32>
    %39 = vector.shape_cast %38 : vector<8xf32> to vector<8x1xf32>
    %40 = vector.broadcast %39 : vector<8x1xf32> to vector<8x8xf32>
    %41 = arith.divf %37, %40 : vector<8x8xf32>
    %cst_27 = arith.constant dense<0.000000e+00> : vector<8x8xf32>
    %42 = tpu.matmul %41, %23, %cst_27 {dimension_numbers = #tpu.dot_dimension_numbers<[1], [0], [0], [1], [0, 0, 1, 1], [], []>} : vector<8x8xf32>, vector<8x8xf32>, vector<8x8xf32> -> vector<8x8xf32>
    %c0_28 = arith.constant 0 : index
    %c0_29 = arith.constant 0 : index
    %43 = vector.load %arg9[%c0_28, %c0_29] : memref<32x32xf32, #tpu.memory_space<vmem>>, vector<8x32xf32>
    %cst_30 = arith.constant dense<0.000000e+00> : vector<8x32xf32>
    %44 = tpu.matmul %42, %43, %cst_30 {dimension_numbers = #tpu.dot_dimension_numbers<[1], [0], [0], [1], [0, 0, 1, 1], [], []>} : vector<8x8xf32>, vector<8x32xf32>, vector<8x32xf32> -> vector<8x32xf32>
    %45 = arith.addf %20, %44 : vector<8x32xf32>
    %46 = vector.extract_strided_slice %5 {offsets = [0, 8], sizes = [8, 8], strides = [1, 1]} : vector<8x32xf32> to vector<8x8xf32>
    %47 = vector.extract_strided_slice %10 {offsets = [0, 8], sizes = [8, 8], strides = [1, 1]} : vector<8x32xf32> to vector<8x8xf32>
    %48 = vector.extract_strided_slice %15 {offsets = [0, 8], sizes = [8, 8], strides = [1, 1]} : vector<8x32xf32> to vector<8x8xf32>
    %49 = tpu.transpose %47, [1, 0] : vector<8x8xf32> -> vector<8x8xf32>
    %cst_31 = arith.constant dense<0.000000e+00> : vector<8x8xf32>
    %50 = tpu.matmul %46, %49, %cst_31 {dimension_numbers = #tpu.dot_dimension_numbers<[1], [0], [0], [1], [0, 0, 1, 1], [], []>} : vector<8x8xf32>, vector<8x8xf32>, vector<8x8xf32> -> vector<8x8xf32>
    %cst_32 = arith.constant 0.353553385 : f32
    %51 = vector.broadcast %cst_32 : f32 to vector<8x8xf32>
    %52 = arith.mulf %50, %51 : vector<8x8xf32>
    %53 = vector.broadcast %19 : vector<1x8xf32> to vector<8x8xf32>
    %54 = arith.addf %52, %53 : vector<8x8xf32>
    %c1 = arith.constant 1 : index
    %c0_33 = arith.constant 0 : index
    %c0_34 = arith.constant 0 : index
    %55 = vector.load %arg14[%c1, %c0_33, %c0_34] : memref<4x8x8xf32, #tpu.memory_space<vmem>>, vector<1x8x8xf32>
    %56 = vector.shape_cast %55 : vector<1x8x8xf32> to vector<8x8xf32>
    %57 = vector.shape_cast %54 : vector<8x8xf32> to vector<1x8x8xf32>
    tpu.vector_store %arg14[%c1, %c0_33, %c0_34], %57 {strides = array<i32>} : memref<4x8x8xf32, #tpu.memory_space<vmem>>, vector<1x8x8xf32>,
    %cst_35 = arith.constant dense<0xFF800000> : vector<8xf32>
    %58 = vector.multi_reduction <maximumf>, %54, %cst_35 [1] : vector<8x8xf32> to vector<8xf32>
    %59 = vector.shape_cast %58 : vector<8xf32> to vector<8x1xf32>
    %60 = vector.broadcast %59 : vector<8x1xf32> to vector<8x8xf32>
    %61 = arith.subf %54, %60 : vector<8x8xf32>
    %62 = math.exp %61 : vector<8x8xf32>
    %cst_36 = arith.constant dense<0.000000e+00> : vector<8xf32>
    %63 = vector.multi_reduction <add>, %62, %cst_36 [1] : vector<8x8xf32> to vector<8xf32>
    %64 = vector.shape_cast %63 : vector<8xf32> to vector<8x1xf32>
    %65 = vector.broadcast %64 : vector<8x1xf32> to vector<8x8xf32>
    %66 = arith.divf %62, %65 : vector<8x8xf32>
    %cst_37 = arith.constant dense<0.000000e+00> : vector<8x8xf32>
    %67 = tpu.matmul %66, %48, %cst_37 {dimension_numbers = #tpu.dot_dimension_numbers<[1], [0], [0], [1], [0, 0, 1, 1], [], []>} : vector<8x8xf32>, vector<8x8xf32>, vector<8x8xf32> -> vector<8x8xf32>
    %c8 = arith.constant 8 : index
    %c0_38 = arith.constant 0 : index
    %68 = vector.load %arg9[%c8, %c0_38] : memref<32x32xf32, #tpu.memory_space<vmem>>, vector<8x32xf32>
    %cst_39 = arith.constant dense<0.000000e+00> : vector<8x32xf32>
    %69 = tpu.matmul %67, %68, %cst_39 {dimension_numbers = #tpu.dot_dimension_numbers<[1], [0], [0], [1], [0, 0, 1, 1], [], []>} : vector<8x8xf32>, vector<8x32xf32>, vector<8x32xf32> -> vector<8x32xf32>
    %70 = arith.addf %45, %69 : vector<8x32xf32>
    %71 = vector.extract_strided_slice %5 {offsets = [0, 16], sizes = [8, 8], strides = [1, 1]} : vector<8x32xf32> to vector<8x8xf32>
    %72 = vector.extract_strided_slice %10 {offsets = [0, 16], sizes = [8, 8], strides = [1, 1]} : vector<8x32xf32> to vector<8x8xf32>
    %73 = vector.extract_strided_slice %15 {offsets = [0, 16], sizes = [8, 8], strides = [1, 1]} : vector<8x32xf32> to vector<8x8xf32>
    %74 = tpu.transpose %72, [1, 0] : vector<8x8xf32> -> vector<8x8xf32>
    %cst_40 = arith.constant dense<0.000000e+00> : vector<8x8xf32>
    %75 = tpu.matmul %71, %74, %cst_40 {dimension_numbers = #tpu.dot_dimension_numbers<[1], [0], [0], [1], [0, 0, 1, 1], [], []>} : vector<8x8xf32>, vector<8x8xf32>, vector<8x8xf32> -> vector<8x8xf32>
    %cst_41 = arith.constant 0.353553385 : f32
    %76 = vector.broadcast %cst_41 : f32 to vector<8x8xf32>
    %77 = arith.mulf %75, %76 : vector<8x8xf32>
    %78 = vector.broadcast %19 : vector<1x8xf32> to vector<8x8xf32>
    %79 = arith.addf %77, %78 : vector<8x8xf32>
    %c2 = arith.constant 2 : index
    %c0_42 = arith.constant 0 : index
    %c0_43 = arith.constant 0 : index
    %80 = vector.load %arg14[%c2, %c0_42, %c0_43] : memref<4x8x8xf32, #tpu.memory_space<vmem>>, vector<1x8x8xf32>
    %81 = vector.shape_cast %80 : vector<1x8x8xf32> to vector<8x8xf32>
    %82 = vector.shape_cast %79 : vector<8x8xf32> to vector<1x8x8xf32>
    tpu.vector_store %arg14[%c2, %c0_42, %c0_43], %82 {strides = array<i32>} : memref<4x8x8xf32, #tpu.memory_space<vmem>>, vector<1x8x8xf32>,
    %cst_44 = arith.constant dense<0xFF800000> : vector<8xf32>
    %83 = vector.multi_reduction <maximumf>, %79, %cst_44 [1] : vector<8x8xf32> to vector<8xf32>
    %84 = vector.shape_cast %83 : vector<8xf32> to vector<8x1xf32>
    %85 = vector.broadcast %84 : vector<8x1xf32> to vector<8x8xf32>
    %86 = arith.subf %79, %85 : vector<8x8xf32>
    %87 = math.exp %86 : vector<8x8xf32>
    %cst_45 = arith.constant dense<0.000000e+00> : vector<8xf32>
    %88 = vector.multi_reduction <add>, %87, %cst_45 [1] : vector<8x8xf32> to vector<8xf32>
    %89 = vector.shape_cast %88 : vector<8xf32> to vector<8x1xf32>
    %90 = vector.broadcast %89 : vector<8x1xf32> to vector<8x8xf32>
    %91 = arith.divf %87, %90 : vector<8x8xf32>
    %cst_46 = arith.constant dense<0.000000e+00> : vector<8x8xf32>
    %92 = tpu.matmul %91, %73, %cst_46 {dimension_numbers = #tpu.dot_dimension_numbers<[1], [0], [0], [1], [0, 0, 1, 1], [], []>} : vector<8x8xf32>, vector<8x8xf32>, vector<8x8xf32> -> vector<8x8xf32>
    %c16 = arith.constant 16 : index
    %c0_47 = arith.constant 0 : index
    %93 = vector.load %arg9[%c16, %c0_47] : memref<32x32xf32, #tpu.memory_space<vmem>>, vector<8x32xf32>
    %cst_48 = arith.constant dense<0.000000e+00> : vector<8x32xf32>
    %94 = tpu.matmul %92, %93, %cst_48 {dimension_numbers = #tpu.dot_dimension_numbers<[1], [0], [0], [1], [0, 0, 1, 1], [], []>} : vector<8x8xf32>, vector<8x32xf32>, vector<8x32xf32> -> vector<8x32xf32>
    %95 = arith.addf %70, %94 : vector<8x32xf32>
    %96 = vector.extract_strided_slice %5 {offsets = [0, 24], sizes = [8, 8], strides = [1, 1]} : vector<8x32xf32> to vector<8x8xf32>
    %97 = vector.extract_strided_slice %10 {offsets = [0, 24], sizes = [8, 8], strides = [1, 1]} : vector<8x32xf32> to vector<8x8xf32>
    %98 = vector.extract_strided_slice %15 {offsets = [0, 24], sizes = [8, 8], strides = [1, 1]} : vector<8x32xf32> to vector<8x8xf32>
    %99 = tpu.transpose %97, [1, 0] : vector<8x8xf32> -> vector<8x8xf32>
    %cst_49 = arith.constant dense<0.000000e+00> : vector<8x8xf32>
    %100 = tpu.matmul %96, %99, %cst_49 {dimension_numbers = #tpu.dot_dimension_numbers<[1], [0], [0], [1], [0, 0, 1, 1], [], []>} : vector<8x8xf32>, vector<8x8xf32>, vector<8x8xf32> -> vector<8x8xf32>
    %cst_50 = arith.constant 0.353553385 : f32
    %101 = vector.broadcast %cst_50 : f32 to vector<8x8xf32>
    %102 = arith.mulf %100, %101 : vector<8x8xf32>
    %103 = vector.broadcast %19 : vector<1x8xf32> to vector<8x8xf32>
    %104 = arith.addf %102, %103 : vector<8x8xf32>
    %c3 = arith.constant 3 : index
    %c0_51 = arith.constant 0 : index
    %c0_52 = arith.constant 0 : index
    %105 = vector.load %arg14[%c3, %c0_51, %c0_52] : memref<4x8x8xf32, #tpu.memory_space<vmem>>, vector<1x8x8xf32>
    %106 = vector.shape_cast %105 : vector<1x8x8xf32> to vector<8x8xf32>
    %107 = vector.shape_cast %104 : vector<8x8xf32> to vector<1x8x8xf32>
    tpu.vector_store %arg14[%c3, %c0_51, %c0_52], %107 {strides = array<i32>} : memref<4x8x8xf32, #tpu.memory_space<vmem>>, vector<1x8x8xf32>,
    %cst_53 = arith.constant dense<0xFF800000> : vector<8xf32>
    %108 = vector.multi_reduction <maximumf>, %104, %cst_53 [1] : vector<8x8xf32> to vector<8xf32>
    %109 = vector.shape_cast %108 : vector<8xf32> to vector<8x1xf32>
    %110 = vector.broadcast %109 : vector<8x1xf32> to vector<8x8xf32>
    %111 = arith.subf %104, %110 : vector<8x8xf32>
    %112 = math.exp %111 : vector<8x8xf32>
    %cst_54 = arith.constant dense<0.000000e+00> : vector<8xf32>
    %113 = vector.multi_reduction <add>, %112, %cst_54 [1] : vector<8x8xf32> to vector<8xf32>
    %114 = vector.shape_cast %113 : vector<8xf32> to vector<8x1xf32>
    %115 = vector.broadcast %114 : vector<8x1xf32> to vector<8x8xf32>
    %116 = arith.divf %112, %115 : vector<8x8xf32>
    %cst_55 = arith.constant dense<0.000000e+00> : vector<8x8xf32>
    %117 = tpu.matmul %116, %98, %cst_55 {dimension_numbers = #tpu.dot_dimension_numbers<[1], [0], [0], [1], [0, 0, 1, 1], [], []>} : vector<8x8xf32>, vector<8x8xf32>, vector<8x8xf32> -> vector<8x8xf32>
    %c24 = arith.constant 24 : index
    %c0_56 = arith.constant 0 : index
    %118 = vector.load %arg9[%c24, %c0_56] : memref<32x32xf32, #tpu.memory_space<vmem>>, vector<8x32xf32>
    %cst_57 = arith.constant dense<0.000000e+00> : vector<8x32xf32>
    %119 = tpu.matmul %117, %118, %cst_57 {dimension_numbers = #tpu.dot_dimension_numbers<[1], [0], [0], [1], [0, 0, 1, 1], [], []>} : vector<8x8xf32>, vector<8x32xf32>, vector<8x32xf32> -> vector<8x32xf32>
    %120 = arith.addf %95, %119 : vector<8x32xf32>
    %c0_58 = arith.constant 0 : index
    %c0_59 = arith.constant 0 : index
    %121 = vector.load %arg10[%c0_58, %c0_59] : memref<1x32xf32, #tpu.memory_space<vmem>>, vector<1x32xf32>
    %122 = vector.broadcast %121 : vector<1x32xf32> to vector<8x32xf32>
    %123 = arith.addf %120, %122 : vector<8x32xf32>
    %124 = arith.addf %0, %123 : vector<8x32xf32>
    %cst_60 = arith.constant dense<0.000000e+00> : vector<8xf32>
    %125 = vector.multi_reduction <add>, %124, %cst_60 [1] : vector<8x32xf32> to vector<8xf32>
    %126 = vector.shape_cast %125 : vector<8xf32> to vector<8x1xf32>
    %cst_61 = arith.constant 3.200000e+01 : f32
    %127 = vector.broadcast %cst_61 : f32 to vector<8x1xf32>
    %128 = arith.divf %126, %127 : vector<8x1xf32>
    %129 = arith.mulf %124, %124 : vector<8x32xf32>
    %cst_62 = arith.constant dense<0.000000e+00> : vector<8xf32>
    %130 = vector.multi_reduction <add>, %129, %cst_62 [1] : vector<8x32xf32> to vector<8xf32>
    %131 = vector.shape_cast %130 : vector<8xf32> to vector<8x1xf32>
    %cst_63 = arith.constant 3.200000e+01 : f32
    %132 = vector.broadcast %cst_63 : f32 to vector<8x1xf32>
    %133 = arith.divf %131, %132 : vector<8x1xf32>
    %134 = arith.mulf %128, %128 : vector<8x1xf32>
    %135 = arith.subf %133, %134 : vector<8x1xf32>
    %136 = vector.broadcast %128 : vector<8x1xf32> to vector<8x32xf32>
    %137 = arith.subf %124, %136 : vector<8x32xf32>
    %cst_64 = arith.constant 9.99999974E-6 : f32
    %138 = vector.broadcast %cst_64 : f32 to vector<8x1xf32>
    %139 = arith.addf %135, %138 : vector<8x1xf32>
    %140 = math.rsqrt %139 : vector<8x1xf32>
    %141 = vector.broadcast %140 : vector<8x1xf32> to vector<8x32xf32>
    %142 = arith.mulf %137, %141 : vector<8x32xf32>
    %c0_65 = arith.constant 0 : index
    %c0_66 = arith.constant 0 : index
    %143 = vector.load %arg11[%c0_65, %c0_66] : memref<1x32xf32, #tpu.memory_space<vmem>>, vector<1x32xf32>
    %144 = vector.broadcast %143 : vector<1x32xf32> to vector<8x32xf32>
    %145 = arith.mulf %142, %144 : vector<8x32xf32>
    %c0_67 = arith.constant 0 : index
    %c0_68 = arith.constant 0 : index
    %146 = vector.load %arg12[%c0_67, %c0_68] : memref<1x32xf32, #tpu.memory_space<vmem>>, vector<1x32xf32>
    %147 = vector.broadcast %146 : vector<1x32xf32> to vector<8x32xf32>
    %148 = arith.addf %145, %147 : vector<8x32xf32>
    %c0_69 = arith.constant 0 : index
    %c0_70 = arith.constant 0 : index
    %149 = vector.load %arg13[%c0_69, %c0_70] : memref<8x32xf32, #tpu.memory_space<vmem>>, vector<8x32xf32>
    tpu.vector_store %arg13[%c0_69, %c0_70], %148 {strides = array<i32>} : memref<8x32xf32, #tpu.memory_space<vmem>>, vector<8x32xf32>,
    return
  }
  func.func @transform_0(%arg0: i32) -> (i32, i32) {
    %c0_i32 = arith.constant 0 : i32
    %c0_i32_0 = arith.constant 0 : i32
    return %arg0, %c0_i32 : i32, i32
  }
  func.func @transform_1(%arg0: i32) -> (i32, i32, i32) {
    %c0_i32 = arith.constant 0 : i32
    %c0_i32_0 = arith.constant 0 : i32
    %c0_i32_1 = arith.constant 0 : i32
    return %arg0, %c0_i32, %c0_i32_0 : i32, i32, i32
  }
  func.func @transform_2(%arg0: i32) -> (i32, i32) {
    %c0_i32 = arith.constant 0 : i32
    %c0_i32_0 = arith.constant 0 : i32
    %c0_i32_1 = arith.constant 0 : i32
    return %c0_i32, %c0_i32_0 : i32, i32
  }
  func.func @transform_3(%arg0: i32) -> (i32, i32) {
    %c0_i32 = arith.constant 0 : i32
    %c0_i32_0 = arith.constant 0 : i32
    %c0_i32_1 = arith.constant 0 : i32
    return %c0_i32, %c0_i32_0 : i32, i32
  }
  func.func @transform_4(%arg0: i32) -> (i32, i32) {
    %c0_i32 = arith.constant 0 : i32
    %c0_i32_0 = arith.constant 0 : i32
    %c0_i32_1 = arith.constant 0 : i32
    return %c0_i32, %c0_i32_0 : i32, i32
  }
  func.func @transform_5(%arg0: i32) -> (i32, i32) {
    %c0_i32 = arith.constant 0 : i32
    %c0_i32_0 = arith.constant 0 : i32
    %c0_i32_1 = arith.constant 0 : i32
    return %c0_i32, %c0_i32_0 : i32, i32
  }
  func.func @transform_6(%arg0: i32) -> (i32, i32) {
    %c0_i32 = arith.constant 0 : i32
    %c0_i32_0 = arith.constant 0 : i32
    %c0_i32_1 = arith.constant 0 : i32
    return %c0_i32, %c0_i32_0 : i32, i32
  }
  func.func @transform_7(%arg0: i32) -> (i32, i32) {
    %c0_i32 = arith.constant 0 : i32
    %c0_i32_0 = arith.constant 0 : i32
    %c0_i32_1 = arith.constant 0 : i32
    return %c0_i32, %c0_i32_0 : i32, i32
  }
  func.func @transform_8(%arg0: i32) -> (i32, i32) {
    %c0_i32 = arith.constant 0 : i32
    %c0_i32_0 = arith.constant 0 : i32
    %c0_i32_1 = arith.constant 0 : i32
    return %c0_i32, %c0_i32_0 : i32, i32
  }
  func.func @transform_9(%arg0: i32) -> (i32, i32) {
    %c0_i32 = arith.constant 0 : i32
    %c0_i32_0 = arith.constant 0 : i32
    %c0_i32_1 = arith.constant 0 : i32
    return %c0_i32, %c0_i32_0 : i32, i32
  }
  func.func @transform_10(%arg0: i32) -> (i32, i32) {
    %c0_i32 = arith.constant 0 : i32
    %c0_i32_0 = arith.constant 0 : i32
    %c0_i32_1 = arith.constant 0 : i32
    return %c0_i32, %c0_i32_0 : i32, i32
  }
  func.func @transform_11(%arg0: i32) -> (i32, i32) {
    %c0_i32 = arith.constant 0 : i32
    %c0_i32_0 = arith.constant 0 : i32
    %c0_i32_1 = arith.constant 0 : i32
    return %c0_i32, %c0_i32_0 : i32, i32
  }
  func.func @transform_12(%arg0: i32) -> (i32, i32) {
    %c0_i32 = arith.constant 0 : i32
    %c0_i32_0 = arith.constant 0 : i32
    return %arg0, %c0_i32 : i32, i32
  }
  func.func @transform_13(%arg0: i32) -> (i32, i32, i32) {
    %c0_i32 = arith.constant 0 : i32
    %c0_i32_0 = arith.constant 0 : i32
    %c0_i32_1 = arith.constant 0 : i32
    return %arg0, %c0_i32, %c0_i32_0 : i32, i32, i32
  }
}

</mosaic_0001>

<bundles_post_ra>
// kernel: tpu_custom_call.1
= control target key start
LH: loop header
LB: loop body
LE: loop exit
PB: predicated region body
PF: predicated region fallthrough
CT: control target
= control target key end

     0   :  { %s3145_s0 = inlined_call_operand.hbm [shape: f32[16,32], index: 0, kind: input, shape index: {}]   ;;  %s3146_s1 = inlined_call_operand.hbm [shape: f32[2,1,8], index: 1, kind: input, shape index: {}]   ;;  %s3147_s2 = inlined_call_operand.hbm [shape: f32[32,32], index: 2, kind: input, shape index: {}]   ;;  %s3148_s3 = inlined_call_operand.vmem [shape: f32[1,32], index: 3, kind: input, shape index: {}]   ;;  %s3149_s4 = inlined_call_operand.hbm [shape: f32[32,32], index: 4, kind: input, shape index: {}]   ;;  %s3150_s5 = inlined_call_operand.vmem [shape: f32[1,32], index: 5, kind: input, shape index: {}]   ;;  %s3151_s6 = inlined_call_operand.hbm [shape: f32[32,32], index: 6, kind: input, shape index: {}]   ;;  %s3152_s7 = inlined_call_operand.vmem [shape: f32[1,32], index: 7, kind: input, shape index: {}]   ;;  %s3153_s8 = inlined_call_operand.hbm [shape: f32[32,32], index: 8, kind: input, shape index: {}]   ;;  %s3154_s9 = inlined_call_operand.vmem [shape: f32[1,32], index: 9, kind: input, shape index: {}]   ;;  %s3155_s10 = inlined_call_operand.vmem [shape: f32[1,32], index: 10, kind: input, shape index: {}]   ;;  %s3156_s11 = inlined_call_operand.vmem [shape: f32[1,32], index: 11, kind: input, shape index: {}]   ;;  %s3157_s12 = inlined_call_operand.hbm [shape: f32[16,32], index: 12, kind: output, shape index: {0}]   ;;  %s3158_s13 = inlined_call_operand.hbm [shape: f32[8,8,8], index: 13, kind: output, shape index: {1}]  }
   0x1   :  { %3168 = sst [smem:[#allocation28_spill]] %s3145_s0 }
   0x2   :  { %3169 = sst [smem:[#allocation29_spill]] %s3147_s2 }
   0x3   :  { %3170 = sst [smem:[#allocation30_spill]] %s3149_s4 }
   0x4   :  { %3171 = sst [smem:[#allocation31_spill]] %s3151_s6 }
   0x5   :  { %3172 = sst [smem:[#allocation32_spill]] %s3153_s8 }
   0x6   :  { %19 = vsyncpa [#allocation3], 0 }
   0x7   :  { %21 = vsyncpa [#allocation3 + $0x1], 0 }
   0x8   :  { %22 = vsyncpa [#allocation6], 0 }
   0x9   :  { %24 = vsyncpa [#allocation6 + $0x1], 0 }
   0xa   :  { %25 = vsyncpa [#allocation9], 0 }
   0xb   :  { %26 = vsyncpa [#allocation12], 0 }
   0xc   :  { %27 = vsyncpa [#allocation4], 0 }
   0xd   :  { %29 = vsyncpa [#allocation4 + $0x1], 0 }
   0xe   :  { %30 = vsyncpa [#allocation15], 0 }
   0xf   :  { %32 = vsyncpa [#allocation15 + $0x1], 0  ;;  %s2692_s25 = smov 0   ;;  %s2694_s26 = smov 0  }
  0x10   :  { %s2696_s27 = smov 0   ;;  %s2698_s28 = smov 0  }
  0x11 LB: > { %3173 = sst [smem:[#allocation23_spill]] %s2591_s25  ;;  %s2605_s29 = smov [#allocation7]   ;;  %s2603_s28 = sphi %s2698_s28, %s3204_s28   ;;  %s2599_s27 = sphi %s2696_s27, %s3206_s27   ;;  %s2595_s26 = sphi %s2694_s26, %s3208_s26   ;;  %s2591_s25 = sphi %s2692_s25, %s3207_s25  }
  0x12   : > { %3174 = sst [smem:[#allocation24_spill]] %s2599_s27  ;;  %s369_s30 = sshll.u32 %s2605_s29, 4  ;;  %s370_s30 = int_to_ptr.vmem [resolvable:$true] %s369_s30 }
  0x13   : > { %s2713_s14 = sadd.s32 4294967295, %s2603_s28   ;;  %p2024_p0 = scmp.ge.s32.totalorder %s2603_s28, 1 }
  0x14   : > { %p3162_p1 = scmp.eq.s32.totalorder %s2713_s14, 0  ;;  %p357_p2 = scmp.lt.s32.totalorder %s2603_s28, 3 }
  0x15   : > { %s2606_s16 = smov [#allocation8]   ;;  %s2607_s19 = smov [#allocation10]  }
  0x16   : > { %p2718_p3 = pnand %p2024_p0, %p357_p2  ;;  %s385_s17 = sshll.u32 %s2606_s16, 4  ;;  %s2731_s17 = int_to_ptr.vmem [resolvable:$true] %s385_s17 }
  0x17   : > { %s401_s20 = sshll.u32 %s2607_s19, 4  ;;  %s2344_s21 = scalar_lea.vmem %s370_s30, 512  ;;  %s2733_s20 = int_to_ptr.vmem [resolvable:$true] %s401_s20 }
  0x18   : > { %s3175_s15 = scalar_select %p2718_p3, 1, 0 }
  0x19   : > { %p2233_p5 = pneg %p2718_p3  ;;  %p2345_p8 = scmp.ne.s32.totalorder %s370_s30, %s2344_s21 }
  0x1a   : > { %p2352_p11 = scmp.lt.s32.totalorder %s370_s30, %s370_s30  ;;  %p2353_p12 = scmp.lt.s32.totalorder %s2344_s21, %s2344_s21 }
  0x1b   : > { %p2727_p6 = pnand %p2233_p5, %p3162_p1 }
  0x1c   : > { %p2354_p13 = por %p2353_p12, %p2352_p11 }
  0x1d   : > { %p2335_p7 = pneg %p2727_p6 }
  0x1f   : > { %p2347_p9 = pnand %p2345_p8, %p2335_p7 }
  0x21   : > { %p2348_p10 = pneg %p2347_p9 }
  0x23   : > { %p2355_p0 = pnand %p2354_p13, %p2348_p10 }
  0x25   : > { %2358 = shalt.err (!%p2355_p0)
}
  0x26   : > { %s2608_s22 = smov 128   ;;  %s2609_s23 = smov 8  }
  0x27   : > { %s3177_s2 = sld [smem:[#allocation29_spill]]  ;;  %s2370_s16 = scalar_lea.vmem %s2731_s17, 512 }
  0x28   : > { %p2371_p2 = scmp.ne.s32.totalorder %s2731_s17, %s2370_s16  ;;  %p2378_p9 = scmp.lt.s32.totalorder %s2731_s17, %s2731_s17 }
  0x29   : > { %p2379_p10 = scmp.lt.s32.totalorder %s2370_s16, %s2370_s16 }
  0x2a   : > { %p2373_p5 = pnand %p2371_p2, %p2335_p7 }
  0x2b   : > { %p2380_p11 = por %p2379_p10, %p2378_p9 }
  0x2c   : > { %p2374_p8 = pneg %p2373_p5 }
  0x2d   : > { %2236 = dma.hbm_to_vmem [thread:$0]  (!%p2727_p6), %s3177_s2, 512, %s370_s30, [#allocation6], %s2608_s22, %s2608_s22, %s2609_s23  }
  0x2e   : > { %p2381_p12 = pnand %p2380_p11, %p2374_p8 }
  0x30   : > { %2384 = shalt.err (!%p2381_p12)
}
  0x31   : > { %s3178_s4 = sld [smem:[#allocation30_spill]]  ;;  %s2396_s21 = scalar_lea.vmem %s2733_s20, 512 }
  0x32   : > { %p2397_p13 = scmp.ne.s32.totalorder %s2733_s20, %s2396_s21  ;;  %p2404_p5 = scmp.lt.s32.totalorder %s2733_s20, %s2733_s20 }
  0x33   : > { %p2405_p8 = scmp.lt.s32.totalorder %s2396_s21, %s2396_s21 }
  0x34   : > { %p2399_p0 = pnand %p2397_p13, %p2335_p7 }
  0x35   : > { %p2406_p9 = por %p2405_p8, %p2404_p5 }
  0x36   : > { %p2400_p2 = pneg %p2399_p0 }
  0x37   : > { %2239 = dma.hbm_to_vmem [thread:$0]  (!%p2727_p6), %s3178_s4, 512, %s2731_s17, [#allocation9], %s2608_s22, %s2608_s22, %s2609_s23  }
  0x38   : > { %p2407_p10 = pnand %p2406_p9, %p2400_p2 }
  0x3a   : > { %2410 = shalt.err (!%p2407_p10)
}
  0x3b   : > { %s3179_s6 = sld [smem:[#allocation31_spill]]  ;;  %s2610_s29 = smov [#allocation11]  }
  0x3c   : > { %s417_s16 = sshll.u32 %s2610_s29, 4  ;;  %s418_s16 = int_to_ptr.vmem [resolvable:$true] %s417_s16 }
  0x3d   : > { %s2422_s19 = scalar_lea.vmem %s418_s16, 512  ;;  %p2430_p0 = scmp.lt.s32.totalorder %s418_s16, %s418_s16 }
  0x3e   : > { %p2423_p11 = scmp.ne.s32.totalorder %s418_s16, %s2422_s19  ;;  %p2431_p2 = scmp.lt.s32.totalorder %s2422_s19, %s2422_s19 }
  0x40   : > { %p2425_p12 = pnand %p2423_p11, %p2335_p7  ;;  %p2432_p5 = por %p2431_p2, %p2430_p0 }
  0x41   : > { %2242 = dma.hbm_to_vmem [thread:$0]  (!%p2727_p6), %s3179_s6, 512, %s2733_s20, [#allocation9], %s2608_s22, %s2608_s22, %s2609_s23  }
  0x42   : > { %p2426_p13 = pneg %p2425_p12 }
  0x44   : > { %p2433_p8 = pnand %p2432_p5, %p2426_p13 }
  0x46   : > { %2436 = shalt.err (!%p2433_p8)
}
  0x47   : > { %s3180_s8 = sld [smem:[#allocation32_spill]]  ;;  %s2023_s18 = sadd.s32 4294967294, %s2603_s28  }
  0x48   : > { %s2793_s21 = sadd.s32 1, %s2603_s28   ;;  %s45_s17 = sadd.s32 1, %s2599_s27 }
  0x49   : > { %3181 = sst [smem:[#allocation25_spill]] %s2793_s21  ;;  %s42_s24 = ssub.s32 %s2603_s28, %s2793_s21 }
  0x4a   : > { %p43_p7 = scmp.eq.s32.totalorder %s42_s24, 0  ;;  %p52_p9 = scmp.ne.s32.totalorder %s2599_s27, %s2595_s26 }
  0x4b   : > { %p53_p10 = scmp.eq.s32.totalorder %s2603_s28, 0  ;;  %p58_p11 = scmp.ne.s32.totalorder %s2595_s26, %s2591_s25 }
  0x4c   : > { %s2804_s29 = scalar_select %p43_p7, %s2599_s27, %s45_s17  }
  0x4d   : > { %2245 = dma.hbm_to_vmem [thread:$0]  (!%p2727_p6), %s3180_s8, 512, %s418_s16, [#allocation12], %s2608_s22, %s2608_s22, %s2609_s23  }
  0x4e   : > { %3182 = sst [smem:[#allocation26_spill]] %s2804_s29  ;;  %p2806_p12 = por %p53_p10, %p52_p9 }
  0x4f   : > { %p2812_p6 = por %p3162_p1, %p58_p11  ;;  %p318_p13 = scmp.eq.s32.totalorder %s2713_s14, 1 }
  0x50   : > { %p324_p0 = scmp.eq.s32.totalorder %s2023_s18, 1  ;;  %p2264_p2 = scmp.lt.s32.totalorder %s2603_s28, 2 }
  0x51   : > { %s3184_s22 = scalar_select %p2812_p6, 1, 0 }
  0x52   : > { %s2819_s23 = sand.u32 1, %s2599_s27   ;;  %p2821_p5 = por %p318_p13, %p52_p9 }
  0x53   : > { %p2825_p8 = por %p324_p0, %p58_p11  ;;  %s2030_s30 = sshll.u32 %s2819_s23, 3 }
  0x54   : > { %s3185_s16 = scalar_select %p2821_p5, 1, 0 }
  0x55   : > { %s3186_s20 = scalar_select %p2825_p8, 1, 0 }
  0x56   : > { %s2031_s24 = sshll.u32 %s2603_s28, 7  ;;  %s3188_s0 = sld [smem:[#allocation28_spill]] }
  0x57   : > { %3187 = sst [smem:[#allocation27_spill]] %s3186_s20  ;;  %s444_s18 = scalar_lea.vmem [#allocation2], %s2030_s30 }
  0x58   : > { %s451_s6 = sshll.u32 %s444_s18, 4  ;;  %p2840_p7 = pnand %p2264_p2, %p2806_p12  ;;  %s2836_s6 = int_to_ptr.vmem [resolvable:$true] %s451_s6 }
  0x59   : > { %s441_s27 = scalar_lea.sflag [#allocation3], %s2819_s23 }
  0x5a   : > { %p2439_p10 = pneg %p2840_p7 }
  0x5c   : > { %s2834_s4 = scalar_lea.hbm %s3188_s0, %s2031_s24  ;;  %s2442_s19 = scalar_lea.hbm %s3188_s0, 256 }
  0x5d   : > { %s2437_s21 = scalar_lea.hbm %s2834_s4, 128  ;;  %p2443_p12 = scmp.lt.s32.totalorder %s2834_s4, %s3188_s0 }
  0x5e   : > { %p2438_p9 = scmp.ne.s32.totalorder %s2834_s4, %s2437_s21  ;;  %p2444_p0 = scmp.lt.s32.totalorder %s2442_s19, %s2437_s21 }
  0x60   : > { %p2440_p11 = pnand %p2439_p10, %p2438_p9  ;;  %p2445_p2 = por %p2444_p0, %p2443_p12 }
  0x62   : > { %p2441_p13 = pneg %p2440_p11 }
  0x64   : > { %p2446_p4 = pnand %p2445_p2, %p2441_p13 }
  0x66   : > { %2449 = shalt.err (!%p2446_p4)
}
  0x67   : > { %s2450_s18 = scalar_lea.vmem %s2836_s6, 128  ;;  %s2611_s2 = smov [#allocation2]  }
  0x68   : > { %p2451_p1 = scmp.ne.s32.totalorder %s2836_s6, %s2450_s18  ;;  %s2455_s30 = sshll.u32 %s2611_s2, 4  ;;  %s2456_s30 = int_to_ptr.vmem [resolvable:$false] %s2455_s30 }
  0x69   : > { %s2457_s29 = scalar_lea.vmem %s2456_s30, 256  ;;  %p2458_p8 = scmp.lt.s32.totalorder %s2836_s6, %s2456_s30 }
  0x6a   : > { %p2453_p9 = pnand %p2451_p1, %p2439_p10  ;;  %p2459_p5 = scmp.lt.s32.totalorder %s2457_s29, %s2450_s18 }
  0x6c   : > { %p2454_p11 = pneg %p2453_p9  ;;  %p2460_p6 = por %p2459_p5, %p2458_p8 }
  0x6e   : > { %p2461_p12 = pnand %p2460_p6, %p2454_p11 }
  0x70   : > { %2464 = shalt.err (!%p2461_p12)
}
  0x71   : > { %2249 = dma.hbm_to_vmem [thread:$0]  (!%p2840_p7), %s2834_s4, 128, %s2836_s6, %s441_s27  }
  0x72   : > { %s2032_s21 = sshll.u32 %s2603_s28, 4  ;;  %s461_s19 = scalar_lea.vmem [#allocation5], %s2819_s23 }
  0x73   : > { %s468_s24 = sshll.u32 %s461_s19, 4  ;;  %s466_s30 = scalar_lea.hbm %s3146_s1, %s2032_s21  ;;  %s469_s24 = int_to_ptr.vmem [resolvable:$true] %s468_s24 }
  0x74   : > { %s3190_s29 = sand.u32 1, %s2603_s28   ;;  %s2465_s0 = scalar_lea.hbm %s466_s30, 16 }
  0x75   : > { %s459_s18 = scalar_lea.sflag [#allocation6], %s3190_s29  ;;  %p2466_p1 = scmp.ne.s32.totalorder %s466_s30, %s2465_s0 }
  0x76   : > { %s2470_s4 = scalar_lea.hbm %s3146_s1, 32  ;;  %p2471_p5 = scmp.lt.s32.totalorder %s466_s30, %s3146_s1 }
  0x77   : > { %p2468_p4 = pnand %p2466_p1, %p2439_p10  ;;  %p2472_p8 = scmp.lt.s32.totalorder %s2470_s4, %s2465_s0 }
  0x79   : > { %p2469_p6 = pneg %p2468_p4  ;;  %p2473_p13 = por %p2472_p8, %p2471_p5 }
  0x7b   : > { %p2474_p0 = pnand %p2473_p13, %p2469_p6 }
  0x7d   : > { %2477 = shalt.err (!%p2474_p0)
}
  0x7e   : > { %s2478_s23 = scalar_lea.vmem %s469_s24, 16  ;;  %s2612_s21 = smov [#allocation5]  }
  0x7f   : > { %p2479_p2 = scmp.ne.s32.totalorder %s469_s24, %s2478_s23  ;;  %s2483_s19 = sshll.u32 %s2612_s21, 4  ;;  %s2484_s19 = int_to_ptr.vmem [resolvable:$false] %s2483_s19 }
  0x80   : > { %s2485_s25 = scalar_lea.vmem %s2484_s19, 32  ;;  %p2486_p12 = scmp.lt.s32.totalorder %s469_s24, %s2484_s19 }
  0x81   : > { %p2481_p9 = pnand %p2479_p2, %p2439_p10  ;;  %p2487_p1 = scmp.lt.s32.totalorder %s2485_s25, %s2478_s23 }
  0x83   : > { %p2482_p11 = pneg %p2481_p9  ;;  %p2488_p4 = por %p2487_p1, %p2486_p12 }
  0x85   : > { %p2489_p3 = pnand %p2488_p4, %p2482_p11 }
  0x87   : > { %2492 = shalt.err (!%p2489_p3)
}
  0x88   : > { %2252 = dma.hbm_to_vmem [thread:$0]  (!%p2840_p7), %s466_s30, 16, %s469_s24, %s459_s18  }
  0x89   : > { %p3191_p6 = scmp.ne.s32.totalorder %s3175_s15, 0 }
  0x8a   : > { %s2894_s0 = sand.u32 (!%p3191_p6), 1, %s2595_s26   ;;  %p3192_p10 = scmp.ne.s32.totalorder (!%p3191_p6), %s3184_s22, 0 }
  0x8b   : > { %477 = sbr.rel (%p3191_p6) target bundleno = 2781 (0xadd), region = 68  ;;  %s2034_s20 = sshll.u32 (!%p3191_p6), %s2894_s0, 3 }
  0x8c   : > { %s480_s17 = scalar_lea.sflag (!%p3191_p6), [#allocation3], %s2894_s0  ;;  %s2900_s2 = scalar_lea.vmem (!%p3191_p6), [#allocation2], %s2034_s20 }
  0x90   : > { %2562 = dma.done.wait (%p3192_p10), %s480_s17, 128  }
  0x91   : > { %2564 = vsyncadd (%p3192_p10), %s480_s17, 4294967168  ;;  %s488_s8 = sand.u32 1, %s2713_s14   ;;  %s491_s24 = scalar_lea.vmem [#allocation5], %s2894_s0 }
  0x92   : > { %s489_s15 = scalar_lea.sflag [#allocation6], %s488_s8 }
  0x93   : > { %2566 = dma.done.wait (%p3192_p10), %s489_s15, 16  }
  0x94   : > { %2568 = vsyncadd (%p3192_p10), %s489_s15, 4294967280  ;;  %p3193_p3 = scmp.eq.s32.totalorder %s2713_s14, 0 }
  0x96   : > { %2570 = dma.done.wait (%p3193_p3), [#allocation6], 512   ;;  %p3194_p7 = pmov %p3193_p3 }
  0x97   : > { %p3195_p5 = pmov %p3193_p3 }
  0x98   : > { %2572 = vsyncadd (%p3194_p7), [#allocation6], 4294966784 }
  0x99   : > { %2574 = dma.done.wait (%p3195_p5), [#allocation9], 1024   ;;  %p3196_p8 = pmov %p3193_p3 }
  0x9a   : > { %p3197_p13 = pmov %p3193_p3 }
  0x9b   : > { %2576 = vsyncadd (%p3196_p8), [#allocation9], 4294966272 }
  0x9c   : > { %2578 = dma.done.wait (%p3197_p13), [#allocation12], 512   ;;  %p3198_p0 = pmov %p3193_p3 }
  0x9d   : > { %v2613_v0 = vmov 0.0   ;;  %vm2614_vm0 = vmmov 0   ;;  %v649_v1 = vld [vmem:[#allocation8 + $0x18] sm:$0xff]  ;;  %v648_v3 = vld [vmem:[#allocation8 + $0x10] sm:$0xff]  ;;  %v647_v5 = vld [vmem:[#allocation8 + $0x8] sm:$0xff]  ;;  %vm572_vm1 = vcmask 261120   ;;  %v889_v28 = vlaneseq }
  0x9e   : > { %2580 = vsyncadd (%p3198_p0), [#allocation12], 4294966784  ;;  %2127 = vmatprep.subr.mxu1 %v2613_v0  ;;  %2116 = vmatprep.subr.mxu0 %v2613_v0  ;;  %v564_v2 = vld [vmem:[#allocation7 + $0x18] sm:$0xff]  ;;  %v563_v4 = vld [vmem:[#allocation7 + $0x10] sm:$0xff]  ;;  %vm810_vm2 = vcmask 64512   ;;  %s2615_s4 = smov 120  }
  0x9f   : > { %2135 = vmatprep.mubr.msk.f32.mxu1 %vm2614_vm0, %v2613_v0  ;;  %2124 = vmatprep.mubr.msk.f32.mxu0 %vm2614_vm0, %v2613_v0  ;;  %v562_v6 = vld [vmem:[#allocation7 + $0x8] sm:$0xff]  ;;  %v646_v7 = vld [vmem:[#allocation8] sm:$0xff]  ;;  %v730_v10 = vld [vmem:[#allocation10 + $0x18] sm:$0xff]  ;;  %v890_v29 = vshrl.u32 %v889_v28, 7  ;;  %s2040_s23 = sshll.u32 %s2894_s0, 5  ;;  %s2616_s19 = smov 112  }
  0xa0   : > { %2128 = vmatpush3.msra.mxu1 %v649_v1  ;;  %2117 = vmatpush3.msra.mxu0 %v564_v2  ;;  %v561_v8 = vld [vmem:[#allocation7] sm:$0xff]  ;;  %v2935_v9 = vld [vmem:[%s2900_s2] sm:$0xff]  ;;  %s2996_s21 = scalar_lea.vmem [#allocation14], %s2040_s23  ;;  %s2617_s25 = smov 104  }
  0xa1   : > { %2129 = vmatprep.subr.mxu1 %v2613_v0  ;;  %2118 = vmatprep.subr.mxu0 %v2613_v0  ;;  %v729_v11 = vld [vmem:[#allocation10 + $0x10] sm:$0xff]  ;;  %v728_v12 = vld [vmem:[#allocation10 + $0x8] sm:$0xff]  ;;  %v727_v13 = vld [vmem:[#allocation10] sm:$0xff]  ;;  %v891_v32 = vsub.s32 0, %v890_v29  ;;  %s1860_s8 = sshll.u32 %s2996_s21, 4  ;;  %s2076_s15 = sshll.u32 %s2713_s14, 9  ;;  %s3070_s8 = int_to_ptr.vmem [resolvable:$true] %s1860_s8 }
  0xa2   : > { %2130 = vmatpush3.msra.mxu1 %v648_v3  ;;  %2119 = vmatpush3.msra.mxu0 %v563_v4  ;;  %v2043_v14 = vld [vmem:[%s3150_s5] ss:$0 sm:$0xff]  ;;  %v980_v62 = vld [vmem:[#allocation11] sm:$0xff]  ;;  %s3076_s30 = scalar_lea.hbm %s3158_s13, %s2076_s15  ;;  %s1834_s29 = scalar_lea.sflag [#allocation15], %s2894_s0 }
  0xa3   : > { %2131 = vmatprep.subr.mxu1 %v2613_v0  ;;  %2120 = vmatprep.subr.mxu0 %v2613_v0  ;;  %v2041_v15 = vld [vmem:[%s3148_s3] ss:$0 sm:$0xff]  ;;  %s2493_s18 = scalar_lea.vmem %s3070_s8, 512  ;;  %p3199_p9 = scmp.ne.s32.totalorder %s3185_s16, 0 }
  0xa4   : > { %2132 = vmatpush3.msra.mxu1 %v647_v5  ;;  %2121 = vmatpush3.msra.mxu0 %v562_v6  ;;  %v2045_v22 = vld [vmem:[%s3152_s7] ss:$0 sm:$0xff]  ;;  %p2494_p2 = scmp.ne.s32.totalorder %s3070_s8, %s2493_s18 }
  0xa5   : > { %2133 = vmatprep.subr.mxu1 %v2613_v0  ;;  %2122 = vmatprep.subr.mxu0 %v2613_v0  ;;  %v808_v30 = vld [vmem:[%s491_s24] sm:$0x1] }
  0xa6   : > { %2134 = vmatpush3.msra.mxu1 %v646_v7  ;;  %2123 = vmatpush3.msra.mxu0 %v561_v8  ;;  %v809_v31 = vmul.f32 -10000.0, %v808_v30  ;;  %v1151_v57 = vld [vmem:[#allocation11 + $0x8] sm:$0xff]  ;;  %p2495_p11 = pnand %p2494_p2, %p3199_p9 }
  0xa7   : > { %2136 = vmatmul.mubr.msk.f32.vlgmr.msra.gmra.mxu1 %vm572_vm1, %v2935_v9  ;;  %2125 = vmatmul.mubr.msk.f32.vlgmr.msra.gmra.mxu0 %vm572_vm1, %v2935_v9 }
  0xa8   : > { %2149 = vmatprep.subr.mxu1 %v2613_v0  ;;  %2151 = vmatprep.mubr.msk.f32.mxu1 %vm2614_vm0, %v2613_v0  ;;  %v2993_v33 = vrot.slane %v809_v31, %v891_v32  ;;  %p2496_p12 = pneg %p2495_p11 }
  0xa9   : > { %2138 = vmatprep.subr.mxu0 %v2613_v0  ;;  %2146 = vmatprep.mubr.msk.f32.mxu0 %vm2614_vm0, %v2613_v0 }
  0xaa   : > { %2139 = vmatpush3.msra.mxu0 %v730_v10 }
  0xab   : > { %2140 = vmatprep.subr.mxu0 %v2613_v0 }
  0xac   : > { %2141 = vmatpush3.msra.mxu0 %v729_v11 }
  0xad   : > { %2142 = vmatprep.subr.mxu0 %v2613_v0 }
  0xae   : > { %2143 = vmatpush3.msra.mxu0 %v728_v12 }
  0xaf   : > { %2144 = vmatprep.subr.mxu0 %v2613_v0 }
  0xb0   : > { %2145 = vmatpush3.msra.mxu0 %v727_v13 }
  0xb1   : > { %2147 = vmatmul.mubr.msk.f32.vlgmr.msra.gmra.mxu0 %vm572_vm1, %v2935_v9  ;;  %2159 = vmatprep.subr.mxu0 %v2613_v0 }
  0xb2   : > { %2161 = vmatprep.mubr.msk.f32.mxu0 %vm2614_vm0, %v2613_v0 }
 0x167   : > { %v723_v16 = vpop.f32.mrf.mxu1  ;;  %v642_v17 = vpop.f32.mrf.mxu0 }
 0x168   : > { %v2963_v18 = vadd.f32 %v2043_v14, %v723_v16  ;;  %v2965_v19 = vadd.f32 %v2041_v15, %v642_v17 }
 0x169   : > { %v2137_v20 = vpop.f32.mrf.mxu1  ;;  %v2126_v21 = vpop.f32.mrf.mxu0 }
 0x16a   : > { %983 = vrot.lane.b32.xlu0 %v2963_v18, %s2615_s4  ;;  %2150 = vmatpush3.xpose.msk.msra.mxu1 %vm810_vm2, %v2963_v18 }
 0x16b   : > { %2154 = vmatprep.subr.mxu1 %v2613_v0 }
 0x16d   : > { %2152 = vmatmul.mubr.msk.f32.vlgmr.msra.gmra.mxu1 %vm810_vm2, %v2965_v19 }
 0x16e   : > { %981 = vrot.lane.b32.xlu0 %v2965_v19, %s2615_s4  ;;  %2156 = vmatprep.mubr.msk.f32.mxu1 %vm2614_vm0, %v2613_v0 }
 0x171   : > { %v804_v23 = vpop.f32.mrf.mxu0 }
 0x172   : > { %v2981_v24 = vadd.f32 %v2045_v22, %v804_v23 }
 0x173   : > { %v2148_v25 = vpop.f32.mrf.mxu0 }
 0x174   : > { %2155 = vmatpush3.msra.mxu1 %v2981_v24 }
 0x175   : > { %2164 = vmatprep.subr.mxu1 %v2613_v0 }
 0x1dc   : > { %v984_v26 = vpop.permute.xlu0 %983 }
 0x1dd   : > { %2160 = vmatpush3.xpose.msk.msra.mxu0 %vm810_vm2, %v984_v26 }
 0x1de   : > { %2169 = vmatprep.subr.mxu0 %v2613_v0 }
 0x1e0   : > { %v982_v27 = vpop.permute.xlu0 %981 }
 0x1e1   : > { %2162 = vmatmul.mubr.msk.f32.vlgmr.msra.gmra.mxu0 %vm810_vm2, %v982_v27 }
 0x1e2   : > { %2171 = vmatprep.mubr.msk.f32.mxu0 %vm2614_vm0, %v2613_v0  ;;  %2170 = vmatpush3.msra.mxu0 %v1151_v57 }
 0x1e3   : > { %2179 = vmatprep.subr.mxu0 %v2613_v0 }
 0x22d   : > { %v883_v34 = vpop.f32.mrf.mxu1 }
 0x22e   : > { %v887_v35 = vmul.f32 0.35355338, %v883_v34 }
 0x22f   : > { %v2153_v36 = vpop.f32.mrf.mxu1 }
 0x230   : > { %v894_v37 = vadd.f32 %v2993_v33, %v887_v35 }
 0x232   : > { %895 = vst.msk [vmem:[%s2996_s21] sm:$0xff] %vm810_vm2, %v894_v37  ;;  %v896_v38 = vsel %vm810_vm2, %v894_v37, -inf }
 0x233   : > { %897 = vmax.xlane.f32.xlu1 %v896_v38 }
 0x2a1   : > { %v1055_v39 = vpop.f32.mrf.mxu0 }
 0x2a2   : > { %v1059_v40 = vmul.f32 0.35355338, %v1055_v39 }
 0x2a3   : > { %v2163_v41 = vpop.f32.mrf.mxu0 }
 0x2a4   : > { %v1060_v42 = vadd.f32 %v1059_v40, %v2993_v33 }
 0x2a6   : > { %2052 = vst.msk [vmem:[%s2996_s21 + $0x8] sm:$0xff] %vm810_vm2, %v1060_v42  ;;  %v1063_v43 = vsel %vm810_vm2, %v1060_v42, -inf }
 0x2a7   : > { %1064 = vmax.xlane.f32.xlu1 %v1063_v43  ;;  %v1711_v43 = vld [vmem:[#allocation11 + $0x18] sm:$0xff] }
 0x2bc   : > { %v898_v44 = vpop.xlane.xlu1 %897 }
 0x2bd   : > { %v899_v45 = vsub.f32 %v894_v37, %v898_v44 }
 0x2bf   : > { %v900_v46 = vmul.f32 1.442695, %v899_v45 }
 0x2c1   : > { %2315 = vpow2.f32 %v900_v46 }
 0x2ce   : > { %v2316_v47 = vpop.eup %2315 }
 0x2cf   : > { %v902_v48 = vsel %vm810_vm2, %v2316_v47, 0.0 }
 0x2d0   : > { %903 = vadd.xlane.f32.xlu0 %v902_v48 }
 0x2e6   : > { %1391 = vrot.lane.b32.xlu0 %v2981_v24, %s2616_s19 }
 0x330   : > { %v1065_v49 = vpop.xlane.xlu1 %1064 }
 0x331   : > { %v1066_v50 = vsub.f32 %v1060_v42, %v1065_v49 }
 0x333   : > { %v1067_v51 = vmul.f32 1.442695, %v1066_v50 }
 0x335   : > { %2317 = vpow2.f32 %v1067_v51  ;;  %v2066_v51 = vld [vmem:[%s3154_s9] ss:$0 sm:$0xff] }
 0x342   : > { %v2318_v52 = vpop.eup %2317 }
 0x343   : > { %v1069_v53 = vsel %vm810_vm2, %v2318_v52, 0.0 }
 0x344   : > { %1070 = vadd.xlane.f32.xlu1 %v1069_v53 }
 0x355   : > { %1075 = vrot.lane.b32.xlu1 %v2981_v24, %s2615_s4  ;;  %s2618_s4 = smov [#allocation14]  }
 0x356   : > { %s2497_s6 = sshll.u32 %s2618_s4, 4  ;;  %s2498_s6 = int_to_ptr.vmem [resolvable:$false] %s2497_s6 }
 0x357   : > { %s2499_s27 = scalar_lea.vmem %s2498_s6, 1024  ;;  %p2500_p1 = scmp.lt.s32.totalorder %s3070_s8, %s2498_s6 }
 0x358   : > { %p2501_p4 = scmp.lt.s32.totalorder %s2499_s27, %s2493_s18 }
 0x359   : > { %v904_v54 = vpop.xlane.xlu0 %903  ;;  %1300 = vrot.lane.b32.xlu1 %v2963_v18, %s2616_s19 }
 0x35a   : > { %2319 = vrcp.f32 %v904_v54  ;;  %p2502_p6 = por %p2501_p4, %p2500_p1 }
 0x35c   : > { %p2503_p10 = pnand %p2502_p6, %p2496_p12 }
 0x35d   : > { %1298 = vrot.lane.b32.xlu1 %v2965_v19, %s2616_s19  ;;  %v1392_v1 = vpop.permute.xlu0 %1391 }
 0x367   : > { %v2320_v55 = vpop.eup %2319 }
 0x368   : > { %v906_v56 = vmul.f32 %v2320_v55, %v2316_v47 }
 0x36a   : > { %2157 = vmatmul.mubr.msk.f32.vlgmr.msra.gmra.mxu1 %vm810_vm2, %v906_v56 }
 0x36b   : > { %2166 = vmatprep.mubr.msk.f32.mxu1 %vm2614_vm0, %v2613_v0 }
 0x3cd   : > { %v1071_v58 = vpop.xlane.xlu1 %1070 }
 0x3ce   : > { %2321 = vrcp.f32 %v1071_v58 }
 0x3d1   : > { %v1076_v59 = vpop.permute.xlu1 %1075 }
 0x3d2   : > { %2165 = vmatpush3.msra.mxu1 %v1076_v59 }
 0x3d3   : > { %2174 = vmatprep.subr.mxu1 %v2613_v0 }
 0x3d5   : > { %v1301_v3 = vpop.permute.xlu1 %1300 }
 0x3d9   : > { %v1299_v6 = vpop.permute.xlu1 %1298 }
 0x3db   : > { %v2322_v60 = vpop.eup %2321 }
 0x3dc   : > { %v1073_v61 = vmul.f32 %v2322_v60, %v2318_v52 }
 0x3de   : > { %2167 = vmatmul.mubr.msk.f32.vlgmr.msra.gmra.mxu1 %vm810_vm2, %v1073_v61 }
 0x3df   : > { %2175 = vmatpush3.msra.mxu1 %v980_v62  ;;  %2176 = vmatprep.mubr.msk.f32.mxu1 %vm2614_vm0, %v2613_v0 }
 0x3e0   : > { %2184 = vmatprep.subr.mxu1 %v2613_v0 }
 0x42a   : > { %v976_v63 = vpop.f32.mrf.mxu1 }
 0x42b   : > { %2177 = vmatmul.mubr.msk.f32.vlgmr.msra.gmra.mxu1 %vm810_vm2, %v976_v63 }
 0x42c   : > { %2185 = vmatpush3.msra.mxu1 %v1392_v1  ;;  %v2158_v2 = vpop.f32.mrf.mxu1  ;;  %2186 = vmatprep.mubr.msk.f32.mxu1 %vm2614_vm0, %v2613_v0 }
 0x42d   : > { %2194 = vmatprep.subr.mxu1 %v2613_v0 }
 0x49e   : > { %v1147_v4 = vpop.f32.mrf.mxu1 }
 0x49f   : > { %2172 = vmatmul.mubr.msk.f32.vlgmr.msra.gmra.mxu0 %vm810_vm2, %v1147_v4 }
 0x4a0   : > { %2180 = vmatpush3.xpose.msk.msra.mxu0 %vm810_vm2, %v1301_v3  ;;  %v2168_v5 = vpop.f32.mrf.mxu1  ;;  %2181 = vmatprep.mubr.msk.f32.mxu0 %vm2614_vm0, %v2613_v0 }
 0x4a1   : > { %2189 = vmatprep.subr.mxu0 %v2613_v0 }
 0x4a3   : > { %2182 = vmatmul.mubr.msk.f32.vlgmr.msra.gmra.mxu0 %vm810_vm2, %v1299_v6 }
 0x4a4   : > { %2191 = vmatprep.mubr.msk.f32.mxu0 %vm2614_vm0, %v2613_v0 }
 0x4eb   : > { %v1294_v7 = vpop.f32.mrf.mxu1 }
 0x4ed   : > { %v2178_v8 = vpop.f32.mrf.mxu1 }
 0x55f   : > { %v1221_v10 = vpop.f32.mrf.mxu0 }
 0x561   : > { %v2173_v11 = vpop.f32.mrf.mxu0 }
 0x563   : > { %v1372_v12 = vpop.f32.mrf.mxu0 }
 0x564   : > { %v1376_v13 = vmul.f32 0.35355338, %v1372_v12 }
 0x565   : > { %v2183_v14 = vpop.f32.mrf.mxu0 }
 0x566   : > { %v1377_v15 = vadd.f32 %v1376_v13, %v2993_v33 }
 0x568   : > { %2058 = vst.msk [vmem:[%s2996_s21 + $0x10] sm:$0xff] %vm810_vm2, %v1377_v15  ;;  %v1380_v16 = vsel %vm810_vm2, %v1377_v15, -inf }
 0x569   : > { %1381 = vmax.xlane.f32.xlu1 %v1380_v16 }
 0x5f2   : > { %v1382_v17 = vpop.xlane.xlu1 %1381 }
 0x5f3   : > { %v1383_v20 = vsub.f32 %v1377_v15, %v1382_v17 }
 0x5f5   : > { %v1384_v21 = vmul.f32 1.442695, %v1383_v20 }
 0x5f7   : > { %2323 = vpow2.f32 %v1384_v21 }
 0x604   : > { %v2324_v22 = vpop.eup %2323 }
 0x605   : > { %v1386_v23 = vsel %vm810_vm2, %v2324_v22, 0.0 }
 0x606   : > { %1387 = vadd.xlane.f32.xlu0 %v1386_v23 }
 0x61c   : > { %1544 = vrot.lane.b32.xlu0 %v2963_v18, %s2617_s25  ;;  %v1467_v18 = vld [vmem:[#allocation11 + $0x10] sm:$0xff] }
 0x61d   : > { %2190 = vmatpush3.msra.mxu0 %v1467_v18 }
 0x61e   : > { %2199 = vmatprep.subr.mxu0 %v2613_v0 }
 0x620   : > { %1542 = vrot.lane.b32.xlu0 %v2965_v19, %s2617_s25 }
 0x68f   : > { %v1388_v25 = vpop.xlane.xlu0 %1387 }
 0x690   : > { %2325 = vrcp.f32 %v1388_v25 }
 0x693   : > { %v1545_v27 = vpop.permute.xlu0 %1544 }
 0x697   : > { %v1543_v29 = vpop.permute.xlu0 %1542 }
 0x69d   : > { %v2326_v26 = vpop.eup %2325 }
 0x69e   : > { %v1390_v28 = vmul.f32 %v2326_v26, %v2324_v22 }
 0x6a0   : > { %2187 = vmatmul.mubr.msk.f32.vlgmr.msra.gmra.mxu1 %vm810_vm2, %v1390_v28 }
 0x6a1   : > { %2195 = vmatpush3.xpose.msk.msra.mxu1 %vm810_vm2, %v1545_v27  ;;  %2196 = vmatprep.mubr.msk.f32.mxu1 %vm2614_vm0, %v2613_v0 }
 0x6a2   : > { %2204 = vmatprep.subr.mxu1 %v2613_v0 }
 0x6a4   : > { %2197 = vmatmul.mubr.msk.f32.vlgmr.msra.gmra.mxu1 %vm810_vm2, %v1543_v29 }
 0x6a5   : > { %2206 = vmatprep.mubr.msk.f32.mxu1 %vm2614_vm0, %v2613_v0  ;;  %2205 = vmatpush3.msra.mxu1 %v1711_v43 }
 0x760   : > { %v1463_v19 = vpop.f32.mrf.mxu1 }
 0x761   : > { %2192 = vmatmul.mubr.msk.f32.vlgmr.msra.gmra.mxu0 %vm810_vm2, %v1463_v19 }
 0x762   : > { %v2188_v30 = vpop.f32.mrf.mxu1  ;;  %2201 = vmatprep.mubr.msk.f32.mxu0 %vm2614_vm0, %v2613_v0  ;;  %v1295_v0 = vadd.f32 %v1294_v7, %v1221_v10 }
 0x764   : > { %v1616_v31 = vpop.f32.mrf.mxu1 }
 0x765   : > { %v1620_v32 = vmul.f32 0.35355338, %v1616_v31 }
 0x766   : > { %v2198_v34 = vpop.f32.mrf.mxu1 }
 0x767   : > { %v1621_v35 = vadd.f32 %v1620_v32, %v2993_v33 }
 0x769   : > { %2063 = vst.msk [vmem:[%s2996_s21 + $0x18] sm:$0xff] %vm810_vm2, %v1621_v35  ;;  %v1624_v36 = vsel %vm810_vm2, %v1621_v35, -inf }
 0x76a   : > { %1625 = vmax.xlane.f32.xlu0 %v1624_v36 }
 0x7f3   : > { %v1626_v37 = vpop.xlane.xlu0 %1625 }
 0x7f4   : > { %v1627_v38 = vsub.f32 %v1621_v35, %v1626_v37 }
 0x7f6   : > { %v1628_v39 = vmul.f32 1.442695, %v1627_v38 }
 0x7f8   : > { %2327 = vpow2.f32 %v1628_v39 }
 0x805   : > { %v2328_v40 = vpop.eup %2327 }
 0x806   : > { %v1630_v41 = vsel %vm810_vm2, %v2328_v40, 0.0 }
 0x807   : > { %1631 = vadd.xlane.f32.xlu1 %v1630_v41 }
 0x818   : > { %1635 = vrot.lane.b32.xlu1 %v2981_v24, %s2617_s25 }
 0x821   : > { %v1537_v42 = vpop.f32.mrf.mxu0 }
 0x822   : > { %v1541_v33 = vadd.f32 %v1537_v42, %v1295_v0 }
 0x823   : > { %v2193_v44 = vpop.f32.mrf.mxu0 }
 0x890   : > { %v1632_v45 = vpop.xlane.xlu1 %1631 }
 0x891   : > { %2329 = vrcp.f32 %v1632_v45 }
 0x894   : > { %v1636_v46 = vpop.permute.xlu1 %1635 }
 0x895   : > { %2200 = vmatpush3.msra.mxu0 %v1636_v46 }
 0x89e   : > { %v2330_v47 = vpop.eup %2329 }
 0x89f   : > { %v1634_v48 = vmul.f32 %v2330_v47, %v2328_v40 }
 0x8a1   : > { %2202 = vmatmul.mubr.msk.f32.vlgmr.msra.gmra.mxu0 %vm810_vm2, %v1634_v48 }
 0x961   : > { %v1707_v49 = vpop.f32.mrf.mxu0 }
 0x962   : > { %2207 = vmatmul.mubr.msk.f32.vlgmr.msra.gmra.mxu1 %vm810_vm2, %v1707_v49 }
 0x963   : > { %v2203_v24 = vpop.f32.mrf.mxu0 }
 0xa22   : > { %v1781_v50 = vpop.f32.mrf.mxu1 }
 0xa23   : > { %v1785_v52 = vadd.f32 %v1781_v50, %v1541_v33 }
 0xa24   : > { %v2208_v53 = vpop.f32.mrf.mxu1 }
 0xa25   : > { %v1793_v54 = vadd.f32 %v2066_v51, %v1785_v52 }
 0xa27   : > { %v1794_v55 = vadd.f32 %v1793_v54, %v2935_v9 }
 0xa29   : > { %v1795_v56 = vsel %vm572_vm1, %v1794_v55, 0.0  ;;  %v1800_v57 = vmul.f32 %v1794_v55, %v1794_v55 }
 0xa2a   : > { %1796 = vadd.xlane.f32.xlu1 %v1795_v56 }
 0xa2b   : > { %v1801_v58 = vsel %vm572_vm1, %v1800_v57, 0.0 }
 0xa2c   : > { %1802 = vadd.xlane.f32.xlu0 %v1801_v58 }
 0xa2d   : > { %2506 = shalt.err (!%p2503_p10)
}
 0xa2e   : > { %s2507_s23 = scalar_lea.hbm %s3076_s30, 512  ;;  %s2511_s25 = scalar_lea.hbm %s3158_s13, 1024 }
 0xa2f   : > { %p2508_p3 = scmp.ne.s32.totalorder %s3076_s30, %s2507_s23  ;;  %p2512_p8 = scmp.lt.s32.totalorder %s3076_s30, %s3158_s13 }
 0xa30   : > { %p2513_p13 = scmp.lt.s32.totalorder %s2511_s25, %s2507_s23 }
 0xa31   : > { %p2509_p7 = pnand %p2508_p3, %p3199_p9 }
 0xa32   : > { %p2514_p0 = por %p2513_p13, %p2512_p8 }
 0xa33   : > { %p2510_p5 = pneg %p2509_p7 }
 0xa35   : > { %p2515_p2 = pnand %p2514_p0, %p2510_p5 }
 0xa37   : > { %2518 = shalt.err (!%p2515_p2)
}
 0xa38   : > { %s2619_s15 = smov 128   ;;  %s2620_s24 = smov 8   ;;  %v2067_v4 = vld [vmem:[%s3155_s10] ss:$0 sm:$0xff] }
 0xa39   : > { %2230 = dma.vmem_to_hbm [thread:$0]  (%p3199_p9), %s3070_s8, 512, %s3076_s30, %s1834_s29, %s2619_s15, %s2619_s15, %s2620_s24  }
 0xa3a   : > { %v2068_v6 = vld [vmem:[%s3156_s11] ss:$0 sm:$0xff]  ;;  %s2071_s8 = sshll.u32 %s2713_s14, 7  ;;  %s551_s30 = scalar_lea.vmem [#allocation13], %s2034_s20 }
 0xa3b   : > { %s1847_s29 = sshll.u32 %s551_s30, 4  ;;  %s1845_s21 = scalar_lea.hbm %s3157_s12, %s2071_s8  ;;  %s1848_s29 = int_to_ptr.vmem [resolvable:$true] %s1847_s29 }
 0xa3c   : > { %s1829_s19 = scalar_lea.sflag [#allocation4], %s2894_s0  ;;  %s2519_s25 = scalar_lea.vmem %s1848_s29, 128 }
 0xa3d   : > { %p2520_p11 = scmp.ne.s32.totalorder %s1848_s29, %s2519_s25  ;;  %s2621_s17 = smov [#allocation13]  }
 0xa3e   : > { %s2523_s14 = sshll.u32 %s2621_s17, 4  ;;  %s2524_s14 = int_to_ptr.vmem [resolvable:$false] %s2523_s14 }
 0xa3f   : > { %p2521_p12 = pnand %p2520_p11, %p3199_p9  ;;  %s2525_s20 = scalar_lea.vmem %s2524_s14, 256 }
 0xa40   : > { %p2526_p4 = scmp.lt.s32.totalorder %s1848_s29, %s2524_s14  ;;  %p2527_p6 = scmp.lt.s32.totalorder %s2525_s20, %s2519_s25 }
 0xa41   : > { %p2522_p1 = pneg %p2521_p12 }
 0xa42   : > { %p2528_p10 = por %p2527_p6, %p2526_p4 }
 0xa44   : > { %p2529_p3 = pnand %p2528_p10, %p2522_p1 }
 0xab3   : > { %v1797_v9 = vpop.xlane.xlu1 %1796 }
 0xab4   : > { %v1799_v59 = vmul.f32 0.03125, %v1797_v9 }
 0xab5   : > { %v1803_v60 = vpop.xlane.xlu0 %1802 }
 0xab6   : > { %v1805_v61 = vmul.f32 %v1799_v59, %v1799_v59  ;;  %v1804_v62 = vmul.f32 0.03125, %v1803_v60  ;;  %v1807_v2 = vsub.f32 %v1794_v55, %v1799_v59 }
 0xab8   : > { %v1806_v63 = vsub.f32 %v1804_v62, %v1805_v61 }
 0xaba   : > { %v1808_v1 = vadd.f32 1e-05, %v1806_v63 }
 0xabc   : > { %2331 = vrsqrt.f32 %v1808_v1 }
 0xac9   : > { %v2332_v3 = vpop.eup %2331 }
 0xaca   : > { %v1810_v5 = vmul.f32 %v2332_v3, %v1807_v2 }
 0xacc   : > { %v1818_v7 = vmul.f32 %v2067_v4, %v1810_v5 }
 0xace   : > { %v1826_v8 = vadd.f32 %v2068_v6, %v1818_v7 }
 0xad0   : > { %1827 = vst.msk [vmem:[%s551_s30] sm:$0xff] %vm572_vm1, %v1826_v8 }
 0xad1   : > { %2532 = shalt.err (!%p2529_p3)
}
 0xad2   : > { %s2533_s2 = scalar_lea.hbm %s1845_s21, 128  ;;  %s2537_s24 = scalar_lea.hbm %s3157_s12, 256 }
 0xad3   : > { %p2534_p7 = scmp.ne.s32.totalorder %s1845_s21, %s2533_s2  ;;  %p2538_p13 = scmp.lt.s32.totalorder %s1845_s21, %s3157_s12 }
 0xad4   : > { %p2539_p0 = scmp.lt.s32.totalorder %s2537_s24, %s2533_s2 }
 0xad5   : > { %p2535_p5 = pnand %p2534_p7, %p3199_p9 }
 0xad6   : > { %p2540_p2 = por %p2539_p0, %p2538_p13 }
 0xad7   : > { %p2536_p8 = pneg %p2535_p5 }
 0xad9   : > { %p2541_p11 = pnand %p2540_p2, %p2536_p8 }
 0xadb   : > { %2544 = shalt.err (!%p2541_p11)
}
 0xadc   : > { %2229 = dma.vmem_to_hbm [thread:$0]  (%p3199_p9), %s1848_s29, 128, %s1845_s21, %s1829_s19  }
 0xadd PF: > { %s3200_s4 = sld [smem:[#allocation23_spill]]  ;;  %p3203_p1 = scmp.ge.s32.totalorder %s2603_s28, 2 }
 0xade   : > { %s3201_s6 = sld [smem:[#allocation27_spill]] }
 0xae3   : > { %s1875_s8 = sand.u32 1, %s3200_s4  }
 0xae4   : > { %p3202_p12 = scmp.ne.s32.totalorder %s3201_s6, 0  ;;  %s1876_s30 = scalar_lea.sflag [#allocation4], %s1875_s8 }
 0xae6   : > { %p2254_p4 = pnand %p3203_p1, %p3202_p12 }
 0xae8   : > { %p2255_p6 = pneg %p2254_p4 }
 0xaea   : > { %2582 = dma.done.wait (%p2255_p6), %s1876_s30, 128  }
 0xaeb   : > { %2584 = vsyncadd (%p2255_p6), %s1876_s30, 4294967168  ;;  %s1885_s27 = scalar_lea.sflag [#allocation15], %s1875_s8 }
 0xaec   : > { %2586 = dma.done.wait (%p2255_p6), %s1885_s27, 512  }
 0xaed   : > { %2588 = vsyncadd (%p2255_p6), %s1885_s27, 4294966784  ;;  %s3204_s28 = sld [smem:[#allocation25_spill]]  ;;  %s3207_s25 = smov %s2595_s26 }
 0xaee   : > { %s3205_s23 = sld [smem:[#allocation24_spill]] }
 0xaef   : > { %s3206_s27 = sld [smem:[#allocation26_spill]] }
 0xaf3   : > { %p35_p9 = scmp.ge.s32.totalorder %s3204_s28, 4  }
 0xaf4   : > { %s3208_s26 = smov %s3205_s23 }
 0xaf5   :  { %37 = sbr.rel (!%p35_p9) target bundleno = 17 (0x11), region = 162 }
 0xafa   :  { %1890 = vsyncpa [#allocation3], 1 }
 0xafb   :  { %1892 = vsyncpa [#allocation3 + $0x1], 1 }
 0xafc   :  { %1893 = vsyncpa [#allocation6], 1 }
 0xafd   :  { %1895 = vsyncpa [#allocation6 + $0x1], 1 }
 0xafe   :  { %1896 = vsyncpa [#allocation9], 1 }
 0xaff   :  { %1897 = vsyncpa [#allocation12], 1 }
 0xb00   :  { %1898 = vsyncpa [#allocation4], 1 }
 0xb01   :  { %1900 = vsyncpa [#allocation4 + $0x1], 1 }
 0xb02   :  { %1901 = vsyncpa [#allocation15], 1 }
 0xb03   :  { %1903 = vsyncpa [#allocation15 + $0x1], 1 }

</bundles_post_ra>
